<compile_context>
chip_gen: v7x
topology: tpu7x:2x2x1
jax: 0.10.0
libtpu: 0.0.40
codegen_flags: <defaults>
</compile_context>

<pallas_src>
import functools
import math

import jax
import jax.numpy as jnp
from jax import lax
from jax.experimental import pallas as pl
from jax.experimental.pallas import tpu as pltpu


# ----------------------------- generation-aware VMEM budget -------------------

def _vmem_budget_bytes():
    cap = None
    try:
        info = pltpu.get_tpu_info()
        cap = getattr(info, "vmem_capacity_bytes", None)
    except Exception:
        cap = None
    if not cap:
        cap = 64 * 1024 * 1024            # conservative default (v7x-sized)
    # leave ~25% headroom for compiler-internal scratch / semaphores
    return min((int(cap) * 3) // 4, 112 * 1024 * 1024)


_VMEM_BUDGET = _vmem_budget_bytes()
_TM_TARGET = 512 if _VMEM_BUDGET >= (64 << 20) else 256


# ----------------------------- tiling helpers ---------------------------------

def _tile_candidates(dim, align):
    """Divisors of dim that are multiples of align (plus dim itself), descending."""
    cands = {dim}
    for t in range(align, dim, align):
        if dim % t == 0:
            cands.add(t)
    return sorted(cands, reverse=True)


def _pick_tile(dim, target, align):
    if dim <= target:
        return dim
    for t in _tile_candidates(dim, align):
        if t <= target:
            return t
    # TODO(synk): if dim has no aligned divisor <= target, pad M instead of
    # falling back to one huge block.
    return dim


def _head_group(nh):
    return 2 if (nh % 2 == 0 and nh >= 2) else 1


# ----------------------------- dense (full-K matmul + bias + activation) ------

def _dense_kernel(x_ref, w_ref, b_ref, o_ref, *, act):
    y = jnp.dot(x_ref[...], w_ref[...], preferred_element_type=jnp.float32)
    y = y + b_ref[...].astype(jnp.float32)
    if act == "gelu":
        # exact (erf-based) GELU, matching BERT's hidden_act="gelu"
        y = 0.5 * y * (1.0 + lax.erf(y * jnp.float32(1.0 / math.sqrt(2.0))))
    elif act == "tanh":
        y = jnp.tanh(y)
    o_ref[...] = y.astype(o_ref.dtype)


def _dense_tiles(M, K, N):
    budget = int(_VMEM_BUDGET * 0.9)

    def need(tm, tn):
        # double-buffered bf16 x / w / out tiles + f32 bias
        return 2 * (tm * K * 2 + K * tn * 2 + tn * 4 + tm * tn * 2)

    m_cands = [t for t in _tile_candidates(M, 8) if t <= _TM_TARGET]
    if not m_cands:
        m_cands = [_tile_candidates(M, 8)[-1]]
    n_cands = _tile_candidates(N, 128)
    for tn in n_cands:            # prefer full-N (weight stays resident in VMEM)
        for tm in m_cands:        # then the largest row tile that fits
            if need(tm, tn) <= budget:
                return tm, tn
    return m_cands[-1], n_cands[-1]


def dense(x, w, b, act=None, out_dtype=jnp.bfloat16):
    x = x.astype(jnp.bfloat16)
    M, K = x.shape
    N = w.shape[1]
    tm, tn = _dense_tiles(M, K, N)
    grid = (M // tm, N // tn)
    cost = pl.CostEstimate(
        flops=2 * M * N * K,
        transcendentals=M * N if act else 0,
        bytes_accessed=M * K * 2 + K * N * 2 + N * 4 + M * N * 2,
    )
    return pl.pallas_call(
        functools.partial(_dense_kernel, act=act),
        out_shape=jax.ShapeDtypeStruct((M, N), out_dtype),
        grid=grid,
        in_specs=[
            pl.BlockSpec((tm, K), lambda i, j: (i, 0)),
            pl.BlockSpec((K, tn), lambda i, j: (0, j)),
            pl.BlockSpec((1, tn), lambda i, j: (0, j)),
        ],
        out_specs=pl.BlockSpec((tm, tn), lambda i, j: (i, j)),
        compiler_params=pltpu.CompilerParams(
            dimension_semantics=("parallel", "parallel"),
            vmem_limit_bytes=_VMEM_BUDGET,
        ),
        cost_estimate=cost,
    )(x, w, b.reshape(1, N).astype(jnp.float32))


# ----------------------------- dense + residual + LayerNorm (fused) -----------

def _dense_ln_kernel(x_ref, w_ref, b_ref, r_ref, g_ref, bb_ref, o_ref, *, eps):
    y = jnp.dot(x_ref[...], w_ref[...], preferred_element_type=jnp.float32)
    y = y + b_ref[...].astype(jnp.float32) + r_ref[...].astype(jnp.float32)
    mu = jnp.mean(y, axis=-1, keepdims=True)
    yc = y - mu
    var = jnp.mean(yc * yc, axis=-1, keepdims=True)
    out = yc * lax.rsqrt(var + eps) * g_ref[...] + bb_ref[...]
    o_ref[...] = out.astype(o_ref.dtype)


def dense_ln(x, w, b, residual, gamma, beta, eps=1e-12, out_dtype=jnp.bfloat16):
    """LayerNorm(x @ w + b + residual); requires a full-N tile for row stats."""
    x = x.astype(jnp.bfloat16)
    M, K = x.shape
    N = w.shape[1]
    budget = int(_VMEM_BUDGET * 0.9)

    def need(tm):
        return 2 * (tm * K * 2 + K * N * 2 + 3 * N * 4 + 2 * tm * N * 2)

    tm = None
    for t in _tile_candidates(M, 8):
        if t <= _TM_TARGET and need(t) <= budget:
            tm = t
            break
    if tm is None:   # weight too big for a resident full-N tile: unfused path
        y = dense(x, w, b, out_dtype=out_dtype)
        return layer_norm(y, gamma, beta, residual=residual, eps=eps,
                          out_dtype=out_dtype)

    grid = (M // tm,)
    cost = pl.CostEstimate(
        flops=2 * M * N * K + 8 * M * N,
        transcendentals=M,
        bytes_accessed=M * K * 2 + K * N * 2 + 3 * N * 4 + 2 * M * N * 2,
    )
    return pl.pallas_call(
        functools.partial(_dense_ln_kernel, eps=eps),
        out_shape=jax.ShapeDtypeStruct((M, N), out_dtype),
        grid=grid,
        in_specs=[
            pl.BlockSpec((tm, K), lambda i: (i, 0)),
            pl.BlockSpec((K, N), lambda i: (0, 0)),
            pl.BlockSpec((1, N), lambda i: (0, 0)),
            pl.BlockSpec((tm, N), lambda i: (i, 0)),
            pl.BlockSpec((1, N), lambda i: (0, 0)),
            pl.BlockSpec((1, N), lambda i: (0, 0)),
        ],
        out_specs=pl.BlockSpec((tm, N), lambda i: (i, 0)),
        compiler_params=pltpu.CompilerParams(
            dimension_semantics=("parallel",),
            vmem_limit_bytes=_VMEM_BUDGET,
        ),
        cost_estimate=cost,
    )(x, w, b.reshape(1, N).astype(jnp.float32), residual.astype(jnp.bfloat16),
      gamma.reshape(1, N).astype(jnp.float32),
      beta.reshape(1, N).astype(jnp.float32))


# ----------------------------- standalone LayerNorm ---------------------------

def _ln_kernel(x_ref, g_ref, b_ref, o_ref, *, eps):
    x = x_ref[...].astype(jnp.float32)
    mu = jnp.mean(x, axis=-1, keepdims=True)
    xc = x - mu
    var = jnp.mean(xc * xc, axis=-1, keepdims=True)
    y = xc * lax.rsqrt(var + eps) * g_ref[...] + b_ref[...]
    o_ref[...] = y.astype(o_ref.dtype)


def _ln_res_kernel(x_ref, r_ref, g_ref, b_ref, o_ref, *, eps):
    x = x_ref[...].astype(jnp.float32) + r_ref[...].astype(jnp.float32)
    mu = jnp.mean(x, axis=-1, keepdims=True)
    xc = x - mu
    var = jnp.mean(xc * xc, axis=-1, keepdims=True)
    y = xc * lax.rsqrt(var + eps) * g_ref[...] + b_ref[...]
    o_ref[...] = y.astype(o_ref.dtype)


def layer_norm(x, gamma, beta, residual=None, eps=1e-12, out_dtype=jnp.bfloat16):
    M, H = x.shape
    g = gamma.reshape(1, H).astype(jnp.float32)
    b = beta.reshape(1, H).astype(jnp.float32)
    tm = _pick_tile(M, _TM_TARGET, 8)
    grid = (M // tm,)
    tile = pl.BlockSpec((tm, H), lambda i: (i, 0))
    vec = pl.BlockSpec((1, H), lambda i: (0, 0))
    cparams = pltpu.CompilerParams(dimension_semantics=("parallel",),
                                   vmem_limit_bytes=_VMEM_BUDGET)
    if residual is None:
        return pl.pallas_call(
            functools.partial(_ln_kernel, eps=eps),
            out_shape=jax.ShapeDtypeStruct((M, H), out_dtype),
            grid=grid, in_specs=[tile, vec, vec], out_specs=tile,
            compiler_params=cparams,
        )(x, g, b)
    return pl.pallas_call(
        functools.partial(_ln_res_kernel, eps=eps),
        out_shape=jax.ShapeDtypeStruct((M, H), out_dtype),
        grid=grid, in_specs=[tile, tile, vec, vec], out_specs=tile,
        compiler_params=cparams,
    )(x, residual, g, b)


# ----------------------------- scaled-dot-product attention -------------------
# Grid (B, S//tq): one batch element x one query tile per step.  QKV weight
# columns are packed per head-group (pair) so every in-kernel slice and every
# per-group output store is contiguous / lane-aligned.  The 1/sqrt(dh) scale
# is folded into W_q at init; the mask broadcast is hoisted out of the loop.

def _attn_kernel(qkv_ref, m_ref, o_ref, *, nh, dh, group, tq):
    S = qkv_ref.shape[1]
    mask = jnp.broadcast_to(m_ref[0].astype(jnp.float32), (tq, S))
    gd = group * dh
    if tq == S:
        q0 = None
    else:
        q0 = pl.multiple_of(pl.program_id(1) * tq, tq)
    for p in range(nh // group):
        base = p * 3 * gd
        if q0 is None:
            qg = qkv_ref[0, :, pl.ds(base, gd)]                    # (tq, gd)
        else:
            qg = qkv_ref[0, pl.ds(q0, tq), pl.ds(base, gd)]        # (tq, gd)
        kg = qkv_ref[0, :, pl.ds(base + gd, gd)]                   # (S, gd)
        vg = qkv_ref[0, :, pl.ds(base + 2 * gd, gd)]               # (S, gd)
        parts = []
        for h in range(group):
            q = qg[:, h * dh:(h + 1) * dh]
            k = kg[:, h * dh:(h + 1) * dh]
            v = vg[:, h * dh:(h + 1) * dh]
            s = lax.dot_general(q, k, (((1,), (1,)), ((), ())),
                                preferred_element_type=jnp.float32)   # (tq, S)
            s = s + mask                       # scale already folded into W_q
            s = s - jnp.max(s, axis=-1, keepdims=True)
            pr = jnp.exp(s)
            inv = pl.reciprocal(jnp.sum(pr, axis=-1, keepdims=True), approx=True)
            pr = (pr * inv).astype(jnp.bfloat16)
            parts.append(jnp.dot(pr, v, preferred_element_type=jnp.float32))
        ctx = parts[0] if group == 1 else jnp.concatenate(parts, axis=-1)
        o_ref[0, :, p * gd:(p + 1) * gd] = ctx.astype(o_ref.dtype)


def attention(qkv, mask_add, nh, dh):
    # qkv: (B, S, 3H) group-packed; mask_add: (B, 1, S) additive (-10000 on pad)
    B, S, threeH = qkv.shape
    H = nh * dh
    group = _head_group(nh)
    tq = _pick_tile(S, 256, 8)
    nq = S // tq
    cost = pl.CostEstimate(
        flops=4 * B * S * S * H,
        transcendentals=B * nh * S * S,
        bytes_accessed=B * (S * threeH * 2 + S * H * 2 + S * 4),
    )
    return pl.pallas_call(
        functools.partial(_attn_kernel, nh=nh, dh=dh, group=group, tq=tq),
        out_shape=jax.ShapeDtypeStruct((B, S, H), jnp.bfloat16),
        grid=(B, nq),
        in_specs=[
            pl.BlockSpec((1, S, threeH), lambda b, q: (b, 0, 0)),
            pl.BlockSpec((1, 1, S), lambda b, q: (b, 0, 0)),
        ],
        out_specs=pl.BlockSpec((1, tq, H), lambda b, q: (b, q, 0)),
        compiler_params=pltpu.CompilerParams(
            dimension_semantics=("parallel", "parallel"),
            vmem_limit_bytes=_VMEM_BUDGET,
        ),
        cost_estimate=cost,
    )(qkv.astype(jnp.bfloat16), mask_add)


# ----------------------------- parameters -------------------------------------

def _pack_qkv(wq, wk, wv, bq, bk, bv, nh, dh, group):
    """Interleave fused QKV columns so each head-group's Q|K|V block is one
    contiguous, lane-aligned (group*dh)-wide chunk."""
    H = wq.shape[0]
    ng = nh // group
    gd = group * dh
    w = jnp.stack([wq.reshape(H, ng, gd),
                   wk.reshape(H, ng, gd),
                   wv.reshape(H, ng, gd)], axis=2).reshape(H, 3 * H)
    b = jnp.stack([bq.reshape(ng, gd),
                   bk.reshape(ng, gd),
                   bv.reshape(ng, gd)], axis=1).reshape(3 * H)
    return w, b


def init_params(key, cfg):
    H, I = cfg["hidden"], cfg["intermediate"]
    nh = cfg["heads"]
    dh = H // nh
    group = _head_group(nh)
    scale = 1.0 / math.sqrt(dh)

    def norm(k, shape):
        return 0.02 * jax.random.normal(k, shape, dtype=jnp.float32)

    zeros = lambda n: jnp.zeros((n,), jnp.float32)
    ones = lambda n: jnp.ones((n,), jnp.float32)

    keys = jax.random.split(key, 4 + cfg["layers"])
    params = {
        "word_emb": norm(keys[0], (cfg["vocab"], H)),
        "pos_emb": norm(keys[1], (cfg["max_pos"], H)),
        "type_emb": norm(keys[2], (cfg["type_vocab"], H)),
        "emb_ln_g": ones(H), "emb_ln_b": zeros(H),
        "pooler_w": norm(keys[3], (H, H)).astype(jnp.bfloat16),
        "pooler_b": zeros(H),
        "layers": [],
    }
    for li in range(cfg["layers"]):
        lk = jax.random.split(keys[4 + li], 6)
        wq, wk, wv = norm(lk[0], (H, H)), norm(lk[1], (H, H)), norm(lk[2], (H, H))
        bq, bk, bv = zeros(H), zeros(H), zeros(H)
        # fold 1/sqrt(dh) into the Q projection (removes per-score VPU mul)
        wq, bq = wq * scale, bq * scale
        wqkv, bqkv = _pack_qkv(wq, wk, wv, bq, bk, bv, nh, dh, group)
        params["layers"].append({
            "wqkv": wqkv.astype(jnp.bfloat16), "bqkv": bqkv,
            "wo": norm(lk[3], (H, H)).astype(jnp.bfloat16), "bo": zeros(H),
            "ln1_g": ones(H), "ln1_b": zeros(H),
            "w1": norm(lk[4], (H, I)).astype(jnp.bfloat16), "b1": zeros(I),
            "w2": norm(lk[5], (I, H)).astype(jnp.bfloat16), "b2": zeros(H),
            "ln2_g": ones(H), "ln2_b": zeros(H),
        })
    return params


# ----------------------------- FinBERT forward --------------------------------

def finbert_forward(params, input_ids, attention_mask, token_type_ids, cfg):
    """Returns (sequence_output, pooled_output, all_hidden_states) like
    pytorch_transformers.BertModel(output_hidden_states=True)."""
    B, S = input_ids.shape
    H = cfg["hidden"]
    nh = cfg["heads"]
    dh = H // nh

    # --- embeddings (table gathers are glue; LayerNorm is a Pallas kernel) ---
    pos_ids = jnp.broadcast_to(jnp.arange(S, dtype=jnp.int32), (B, S))
    we = jnp.take(params["word_emb"], input_ids, axis=0)
    pe = jnp.take(params["pos_emb"], pos_ids, axis=0)
    te = jnp.take(params["type_emb"], token_type_ids, axis=0)
    emb = (we + pe + te).reshape(B * S, H)
    x = layer_norm(emb, params["emb_ln_g"], params["emb_ln_b"])   # bf16
    # dropout is identity (frozen / eval)
    # TODO(synk): head_mask is not supported (always None in this path).

    hidden_states = [x.reshape(B, S, H)]

    # extended additive attention mask, kept small: (B, 1, S)
    ext = ((1.0 - attention_mask.astype(jnp.float32)) * -10000.0)[:, None, :]

    for lp in params["layers"]:
        qkv = dense(x, lp["wqkv"], lp["bqkv"])                    # (B*S, 3H) bf16
        ctx = attention(qkv.reshape(B, S, 3 * H), ext, nh, dh)    # (B, S, H) bf16
        x = dense_ln(ctx.reshape(B * S, H), lp["wo"], lp["bo"],
                     residual=x, gamma=lp["ln1_g"], beta=lp["ln1_b"])
        inter = dense(x, lp["w1"], lp["b1"], act="gelu")
        x = dense_ln(inter, lp["w2"], lp["b2"],
                     residual=x, gamma=lp["ln2_g"], beta=lp["ln2_b"])
        hidden_states.append(x.reshape(B, S, H))

    sequence_output = x.reshape(B, S, H)
    cls = sequence_output[:, 0, :]                                 # (B, H)
    pooled_output = dense(cls, params["pooler_w"], params["pooler_b"], act="tanh")
    return sequence_output, pooled_output, tuple(hidden_states)


# ----------------------------- main --------------------------------------------

if __name__ == "__main__":
    cfg = dict(vocab=100, hidden=32, layers=2, heads=4,
               intermediate=64, max_pos=64, type_vocab=2)

    key = jax.random.PRNGKey(0)
    pkey, ikey = jax.random.split(key)
    params = init_params(pkey, cfg)

    B, S = 2, 8
    input_ids = jax.random.randint(ikey, (B, S), 0, cfg["vocab"], dtype=jnp.int32)
    attention_mask = jnp.ones((B, S), dtype=jnp.int32)
    token_type_ids = jnp.zeros((B, S), dtype=jnp.int32)

    seq_out, pooled, hiddens = finbert_forward(
        params, input_ids, attention_mask, token_type_ids, cfg)

    jax.block_until_ready(seq_out)
    jax.block_until_ready(pooled)
    for h in hiddens:
        jax.block_until_ready(h)

    assert seq_out.shape == (B, S, cfg["hidden"])
    assert pooled.shape == (B, cfg["hidden"])
    assert len(hiddens) == cfg["layers"] + 1
    assert bool(jnp.all(jnp.isfinite(seq_out.astype(jnp.float32))))
    assert bool(jnp.all(jnp.isfinite(pooled.astype(jnp.float32))))
    print("KERNEL_OK")
</pallas_src>

<mosaic_0001>
module attributes {stable_mosaic.version = 11 : i64} {
  func.func @_ln_kernel(%arg0: i32, %arg1: memref<16x32xf32, #tpu.memory_space<vmem>>, %arg2: memref<1x32xf32, #tpu.memory_space<vmem>>, %arg3: memref<1x32xf32, #tpu.memory_space<vmem>>, %arg4: memref<16x32xbf16, #tpu.memory_space<vmem>>) attributes {dimension_semantics = [#tpu.dimension_semantics<parallel>], iteration_bounds = array<i64: 1>, scalar_prefetch = 0 : i64, scratch_operands = 0 : i64, tpu.core_type = #tpu.core_type<tc>, window_params = [{transform_indices = @transform_0, window_bounds = array<i64: 16, 32>}, {pipeline_mode = #tpu.pipeline_mode<synchronous>, transform_indices = @transform_1, window_bounds = array<i64: 1, 32>}, {pipeline_mode = #tpu.pipeline_mode<synchronous>, transform_indices = @transform_2, window_bounds = array<i64: 1, 32>}, {transform_indices = @transform_3, window_bounds = array<i64: 16, 32>}]} {
    %c0 = arith.constant 0 : index
    %c0_0 = arith.constant 0 : index
    %0 = vector.load %arg1[%c0, %c0_0] : memref<16x32xf32, #tpu.memory_space<vmem>>, vector<16x32xf32>
    %cst = arith.constant dense<0.000000e+00> : vector<16xf32>
    %1 = vector.multi_reduction <add>, %0, %cst [1] : vector<16x32xf32> to vector<16xf32>
    %2 = vector.shape_cast %1 : vector<16xf32> to vector<16x1xf32>
    %cst_1 = arith.constant 3.200000e+01 : f32
    %3 = vector.broadcast %cst_1 : f32 to vector<16x1xf32>
    %4 = arith.divf %2, %3 : vector<16x1xf32>
    %5 = vector.broadcast %4 : vector<16x1xf32> to vector<16x32xf32>
    %6 = arith.subf %0, %5 : vector<16x32xf32>
    %7 = arith.mulf %6, %6 : vector<16x32xf32>
    %cst_2 = arith.constant dense<0.000000e+00> : vector<16xf32>
    %8 = vector.multi_reduction <add>, %7, %cst_2 [1] : vector<16x32xf32> to vector<16xf32>
    %9 = vector.shape_cast %8 : vector<16xf32> to vector<16x1xf32>
    %cst_3 = arith.constant 3.200000e+01 : f32
    %10 = vector.broadcast %cst_3 : f32 to vector<16x1xf32>
    %11 = arith.divf %9, %10 : vector<16x1xf32>
    %cst_4 = arith.constant 9.99999996E-13 : f32
    %12 = vector.broadcast %cst_4 : f32 to vector<16x1xf32>
    %13 = arith.addf %11, %12 : vector<16x1xf32>
    %14 = math.rsqrt %13 : vector<16x1xf32>
    %15 = vector.broadcast %14 : vector<16x1xf32> to vector<16x32xf32>
    %16 = arith.mulf %6, %15 : vector<16x32xf32>
    %c0_5 = arith.constant 0 : index
    %c0_6 = arith.constant 0 : index
    %17 = vector.load %arg2[%c0_5, %c0_6] : memref<1x32xf32, #tpu.memory_space<vmem>>, vector<1x32xf32>
    %18 = vector.broadcast %17 : vector<1x32xf32> to vector<16x32xf32>
    %19 = arith.mulf %16, %18 : vector<16x32xf32>
    %c0_7 = arith.constant 0 : index
    %c0_8 = arith.constant 0 : index
    %20 = vector.load %arg3[%c0_7, %c0_8] : memref<1x32xf32, #tpu.memory_space<vmem>>, vector<1x32xf32>
    %21 = vector.broadcast %20 : vector<1x32xf32> to vector<16x32xf32>
    %22 = arith.addf %19, %21 : vector<16x32xf32>
    %23 = arith.truncf %22 : vector<16x32xf32> to vector<16x32xbf16>
    %c0_9 = arith.constant 0 : index
    %c0_10 = arith.constant 0 : index
    %24 = vector.load %arg4[%c0_9, %c0_10] : memref<16x32xbf16, #tpu.memory_space<vmem>>, vector<16x32xbf16>
    tpu.vector_store %arg4[%c0_9, %c0_10], %23 {strides = array<i32>} : memref<16x32xbf16, #tpu.memory_space<vmem>>, vector<16x32xbf16>,
    return
  }
  func.func @transform_0(%arg0: i32) -> (i32, i32) {
    %c0_i32 = arith.constant 0 : i32
    %c0_i32_0 = arith.constant 0 : i32
    return %arg0, %c0_i32 : i32, i32
  }
  func.func @transform_1(%arg0: i32) -> (i32, i32) {
    %c0_i32 = arith.constant 0 : i32
    %c0_i32_0 = arith.constant 0 : i32
    %c0_i32_1 = arith.constant 0 : i32
    return %c0_i32, %c0_i32_0 : i32, i32
  }
  func.func @transform_2(%arg0: i32) -> (i32, i32) {
    %c0_i32 = arith.constant 0 : i32
    %c0_i32_0 = arith.constant 0 : i32
    %c0_i32_1 = arith.constant 0 : i32
    return %c0_i32, %c0_i32_0 : i32, i32
  }
  func.func @transform_3(%arg0: i32) -> (i32, i32) {
    %c0_i32 = arith.constant 0 : i32
    %c0_i32_0 = arith.constant 0 : i32
    return %arg0, %c0_i32 : i32, i32
  }
}

</mosaic_0001>

<bundles_post_ra>
// kernel: tpu_custom_call.1
= control target key start
LH: loop header
LB: loop body
LE: loop exit
PB: predicated region body
PF: predicated region fallthrough
CT: control target
= control target key end

     0   :  { %8 = vsyncpa [#allocation3], 0  ;;  %s229_s0 = inlined_call_operand.hbm [shape: f32[16,32], index: 0, kind: input, shape index: {}]   ;;  %s230_s1 = inlined_call_operand.vmem [shape: f32[1,32], index: 1, kind: input, shape index: {}]   ;;  %s231_s2 = inlined_call_operand.vmem [shape: f32[1,32], index: 2, kind: input, shape index: {}]   ;;  %s232_s3 = inlined_call_operand.hbm [shape: bf16[16,32], index: 3, kind: output, shape index: {}]  }
   0x1   :  { %9 = vsyncpa [#allocation4], 0  ;;  %s169_s12 = smov [#allocation2]   ;;  %s121_s16 = scalar_lea.hbm %s229_s0, 256 }
   0x2   :  { %s15_s13 = sshll.u32 %s169_s12, 4  ;;  %p122_p0 = scmp.ne.s32.totalorder %s229_s0, %s121_s16  ;;  %s16_s13 = int_to_ptr.vmem [resolvable:$true] %s15_s13 }
   0x3   :  { %p125_p1 = scmp.lt.u32.totalorder %s121_s16, %s229_s0 }
   0x5   :  { %p127_p2 = pnand %p125_p1, %p122_p0 }
   0x7   :  { %130 = shalt.err (!%p127_p2)
}
   0x8   :  { %s131_s21 = scalar_lea.vmem %s16_s13, 256  ;;  %p136_p4 = scmp.lt.s32.totalorder %s16_s13, %s16_s13 }
   0x9   :  { %p132_p3 = scmp.ne.s32.totalorder %s16_s13, %s131_s21  ;;  %p137_p5 = scmp.lt.s32.totalorder %s131_s21, %s131_s21 }
   0xb   :  { %p138_p6 = por %p137_p5, %p136_p4 }
   0xd   :  { %p139_p7 = pnand %p138_p6, %p132_p3 }
   0xf   :  { %142 = shalt.err (!%p139_p7)
}
  0x10   :  { %s170_s22 = smov 128   ;;  %s171_s23 = smov 8  }
  0x11   :  { %21 = dma.hbm_to_vmem [thread:$0]  %s229_s0, 256, %s16_s13, [#allocation3], %s170_s22, %s170_s22, %s171_s23  }
  0x12   :  { %165 = dma.done.wait [#allocation3], 256  }
  0x13   :  { %166 = vsyncadd [#allocation3], 4294967040  ;;  %vm31_vm0 = vcmask 261120   ;;  %v29_v0 = vld [vmem:[#allocation2] sm:$0xff]  ;;  %v30_v1 = vld [vmem:[#allocation2 + $0x8] sm:$0xff]  ;;  %vm85_vm1 = vcmask 257024  }
  0x14   :  { %v32_v2 = vsel %vm31_vm0, %v29_v0, 0.0  ;;  %v35_v3 = vsel %vm31_vm0, %v30_v1, 0.0  ;;  %v105_v21 = vld [vmem:[%s230_s1] ss:$0 sm:$0xff]  ;;  %s172_s29 = smov [#allocation5]  }
  0x15   :  { %33 = vadd.xlane.f32.xlu0 %v32_v2  ;;  %v106_v23 = vld [vmem:[%s231_s2] ss:$0 sm:$0xff]  ;;  %s93_s30 = sshll.u32 %s172_s29, 4  ;;  %s94_s30 = int_to_ptr.vmem [resolvable:$true] %s93_s30 }
  0x16   :  { %s143_s1 = scalar_lea.vmem %s94_s30, 128  ;;  %p148_p9 = scmp.lt.s32.totalorder %s94_s30, %s94_s30 }
  0x17   :  { %p144_p8 = scmp.ne.s32.totalorder %s94_s30, %s143_s1  ;;  %p149_p10 = scmp.lt.s32.totalorder %s143_s1, %s143_s1 }
  0x19   :  { %36 = vadd.xlane.f32.xlu0 %v35_v3  ;;  %p150_p11 = por %p149_p10, %p148_p9 }
  0x1b   :  { %p151_p12 = pnand %p150_p11, %p144_p8 }
  0xa2   :  { %v34_v4 = vpop.xlane.xlu0 %33 }
  0xa3   :  { %v39_v5 = vmul.f32 0.03125, %v34_v4 }
  0xa5   :  { %v41_v6 = vsub.f32 %v29_v0, %v39_v5 }
  0xa6   :  { %v37_v7 = vpop.xlane.xlu0 %36 }
  0xa7   :  { %v40_v8 = vmul.f32 0.03125, %v37_v7  ;;  %v43_v9 = vmul.f32 %v41_v6, %v41_v6 }
  0xa9   :  { %v42_v10 = vsub.f32 %v30_v1, %v40_v8  ;;  %v45_v11 = vsel %vm31_vm0, %v43_v9, 0.0 }
  0xaa   :  { %46 = vadd.xlane.f32.xlu1 %v45_v11 }
  0xab   :  { %v44_v12 = vmul.f32 %v42_v10, %v42_v10 }
  0xad   :  { %v48_v13 = vsel %vm31_vm0, %v44_v12, 0.0 }
  0xae   :  { %49 = vadd.xlane.f32.xlu1 %v48_v13 }
 0x137   :  { %v47_v14 = vpop.xlane.xlu1 %46 }
 0x138   :  { %v51_v15 = vmul.f32 0.03125, %v47_v14 }
 0x13a   :  { %v53_v16 = vadd.f32 1e-12, %v51_v15 }
 0x13b   :  { %v50_v17 = vpop.xlane.xlu1 %49 }
 0x13c   :  { %117 = vrsqrt.f32 %v53_v16  ;;  %v52_v18 = vmul.f32 0.03125, %v50_v17 }
 0x13e   :  { %v54_v19 = vadd.f32 1e-12, %v52_v18 }
 0x140   :  { %119 = vrsqrt.f32 %v54_v19 }
 0x146   :  { %v118_v20 = vpop.eup %117 }
 0x147   :  { %v57_v22 = vmul.f32 %v118_v20, %v41_v6 }
 0x149   :  { %v66_v24 = vmul.f32 %v105_v21, %v57_v22 }
 0x14a   :  { %v120_v25 = vpop.eup %119 }
 0x14b   :  { %v58_v26 = vmul.f32 %v120_v25, %v42_v10  ;;  %v75_v27 = vadd.f32 %v106_v23, %v66_v24 }
 0x14d   :  { %v67_v28 = vmul.f32 %v105_v21, %v58_v26  ;;  %v109_v29 = vpack.c.bf16 %v75_v27, %v75_v27 }
 0x14f   :  { %v76_v30 = vadd.f32 %v106_v23, %v67_v28  ;;  %86 = vst.msk [vmem:[#allocation5] sm:$0xf] %vm85_vm1, %v109_v29 }
 0x151   :  { %v110_v31 = vpack.c.bf16 %v76_v30, %v76_v30 }
 0x153   :  { %87 = vst.msk [vmem:[#allocation5 + $0x4] sm:$0xf] %vm85_vm1, %v110_v31 }
 0x154   :  { %154 = shalt.err (!%p151_p12)
}
 0x155   :  { %s155_s5 = scalar_lea.hbm %s232_s3, 128 }
 0x156   :  { %p156_p13 = scmp.ne.s32.totalorder %s232_s3, %s155_s5  ;;  %p159_p0 = scmp.lt.u32.totalorder %s155_s5, %s232_s3 }
 0x158   :  { %p161_p1 = pnand %p159_p0, %p156_p13 }
 0x15a   :  { %164 = shalt.err (!%p161_p1)
}
 0x15b   :  { %s173_s10 = smov 64   ;;  %s174_s11 = smov 4  }
 0x15c   :  { %99 = dma.vmem_to_hbm [thread:$0]  %s94_s30, 128, %s232_s3, [#allocation4], %s173_s10, %s173_s10, %s174_s11  }
 0x15d   :  { %167 = dma.done.wait [#allocation4], 128  }
 0x15e   :  { %168 = vsyncadd [#allocation4], 4294967168 }
 0x15f   :  { %103 = vsyncpa [#allocation3], 1 }
 0x160   :  { %104 = vsyncpa [#allocation4], 1 }

</bundles_post_ra>
